<compile_context>
chip_gen: v5e
topology: v5e:2x2
jax: 0.10.0
libtpu: 0.0.40
codegen_flags: <defaults>
</compile_context>

<pallas_src>
import jax
import jax.numpy as jnp
from jax.experimental import pallas as pl
from jax.experimental.pallas import tpu as pltpu

OUT_PAD = 128  # lane-dense classifier width


def mlp3_kernel(x_ref,
                w1_ref, s1_ref, t1_ref,
                w2_ref, s2_ref, t2_ref,
                w3_ref, s3_ref, t3_ref,
                o_ref):
    x = x_ref[...]  # bf16 (TB, IN)

    # layer 1: binary linear (bf16 MXU, f32 acc) + folded BN + ReLU
    h1 = jnp.dot(x, w1_ref[...], preferred_element_type=jnp.float32)
    h1 = jnp.maximum(h1 * s1_ref[...] + t1_ref[...], 0.0)

    # layer 2
    h2 = jnp.dot(h1.astype(jnp.bfloat16), w2_ref[...],
                 preferred_element_type=jnp.float32)
    h2 = jnp.maximum(h2 * s2_ref[...] + t2_ref[...], 0.0)

    # classifier (padded to 128 lanes) + folded BN + log-softmax(dim=-1)
    logits = jnp.dot(h2.astype(jnp.bfloat16), w3_ref[...],
                     preferred_element_type=jnp.float32)
    logits = logits * s3_ref[...] + t3_ref[...]      # padded lanes -> -1e30
    m = jnp.max(logits, axis=-1, keepdims=True)
    z = logits - m
    lse = jnp.log(jnp.sum(jnp.exp(z), axis=-1, keepdims=True))
    o_ref[...] = z - lse


def _choose_batch_tile(B):
    # One tile for small batches; otherwise the biggest clean multiple of 128.
    if B <= 1024:
        return B
    for tb in (1024, 512, 256, 128):
        if B % tb == 0:
            return tb
    return B


def mlp3_binary_forward(x, params, *, batch_tile=None):
    """x: (..., in_features)-reshapeable float array. params: folded weights."""
    in_features = params["w1"].shape[0]
    x = x.reshape(-1, in_features).astype(jnp.bfloat16)
    B, IN = x.shape
    n_classes = params["num_classes"]

    TB = batch_tile or _choose_batch_tile(B)
    assert B % TB == 0, "batch must be divisible by the batch tile"
    grid = (B // TB,)

    args = (x,
            params["w1"], params["s1"], params["t1"],
            params["w2"], params["s2"], params["t2"],
            params["w3"], params["s3"], params["t3"])

    def resident(a):
        # whole array is one VMEM-resident block, same for every grid step
        return pl.BlockSpec(a.shape, lambda i: (0,) * a.ndim)

    out = pl.pallas_call(
        mlp3_kernel,
        out_shape=jax.ShapeDtypeStruct((B, OUT_PAD), jnp.float32),
        grid=grid,
        in_specs=[pl.BlockSpec((TB, IN), lambda i: (i, 0))]
                 + [resident(a) for a in args[1:]],
        out_specs=pl.BlockSpec((TB, OUT_PAD), lambda i: (i, 0)),
        compiler_params=pltpu.CompilerParams(
            dimension_semantics=("parallel",)),
    )(*args)
    return out[:, :n_classes]


def make_params(key, in_features, l1, l2, out_features):
    """Deterministic synthetic parameters; BN (inference) + bias folded."""
    ks = jax.random.split(key, 18)

    def layer(kw, kb, kg, kbeta, km, kv, fan_in, fan_out):
        w = jax.random.normal(kw, (fan_in, fan_out), jnp.float32) * 0.05
        w_bin = jnp.where(w >= 0.0, 1.0, -1.0)              # sign binarize
        bias = jax.random.normal(kb, (fan_out,), jnp.float32) * 0.1
        gamma = 1.0 + 0.1 * jax.random.normal(kg, (fan_out,), jnp.float32)
        beta = 0.1 * jax.random.normal(kbeta, (fan_out,), jnp.float32)
        mean = 0.1 * jax.random.normal(km, (fan_out,), jnp.float32)
        var = jnp.abs(jax.random.normal(kv, (fan_out,), jnp.float32)) + 0.5
        eps = 1e-5
        scale = gamma / jnp.sqrt(var + eps)                  # BN scale
        shift = (bias - mean) * scale + beta                 # bias folded in
        return (w_bin.astype(jnp.bfloat16),                  # +/-1 exact in bf16
                scale.reshape(1, -1).astype(jnp.float32),
                shift.reshape(1, -1).astype(jnp.float32))

    w1, s1, t1 = layer(*ks[0:6], in_features, l1)
    w2, s2, t2 = layer(*ks[6:12], l1, l2)
    w3, s3, t3 = layer(*ks[12:18], l2, out_features)

    # pad classifier to a lane-dense 128-wide output
    pad = OUT_PAD - out_features
    w3 = jnp.pad(w3, ((0, 0), (0, pad)))                     # zero columns
    s3 = jnp.pad(s3, ((0, 0), (0, pad)))                     # scale 0
    t3 = jnp.pad(t3, ((0, 0), (0, pad)), constant_values=-1e30)  # never wins max

    return dict(w1=w1, s1=s1, t1=t1, w2=w2, s2=s2, t2=t2,
                w3=w3, s3=s3, t3=t3, num_classes=out_features)


def reference_forward(x, p):
    """Pure-JAX reference mirroring the kernel's bf16-matmul / f32-epilogue math."""
    in_features = p["w1"].shape[0]
    xb = x.reshape(-1, in_features).astype(jnp.bfloat16)
    h1 = jnp.dot(xb, p["w1"], preferred_element_type=jnp.float32)
    h1 = jnp.maximum(h1 * p["s1"] + p["t1"], 0.0)
    h2 = jnp.dot(h1.astype(jnp.bfloat16), p["w2"],
                 preferred_element_type=jnp.float32)
    h2 = jnp.maximum(h2 * p["s2"] + p["t2"], 0.0)
    logits = jnp.dot(h2.astype(jnp.bfloat16), p["w3"],
                     preferred_element_type=jnp.float32)
    logits = logits * p["s3"] + p["t3"]
    return jax.nn.log_softmax(logits, axis=-1)[:, :p["num_classes"]]


if __name__ == "__main__":
    # small shapes consistent with the module (in -> l1 -> l2 -> classes)
    B, IN, L1, L2, OUT = 8, 128, 256, 256, 10

    key = jax.random.PRNGKey(0)
    kx, kp = jax.random.split(key)
    # x arrives as e.g. (B, 1, 16, 8) images; forward does x.view(-1, in_features)
    x_img = jax.random.normal(kx, (B, 1, 16, 8), jnp.float32)

    params = make_params(kp, IN, L1, L2, OUT)

    out = mlp3_binary_forward(x_img, params)
    out = jax.block_until_ready(out)

    ref = reference_forward(x_img, params)
    assert out.shape == (B, OUT)
    assert bool(jnp.all(jnp.isfinite(out)))
    assert jnp.allclose(out, ref, atol=2e-3, rtol=2e-3), (
        float(jnp.max(jnp.abs(out - ref))))

    print("KERNEL_OK")
</pallas_src>

<mosaic_0001>
module attributes {stable_mosaic.version = 11 : i64} {
  func.func @mlp3_kernel(%arg0: i32, %arg1: memref<8x128xbf16, #tpu.memory_space<vmem>>, %arg2: memref<128x256xbf16, #tpu.memory_space<vmem>>, %arg3: memref<1x256xf32, #tpu.memory_space<vmem>>, %arg4: memref<1x256xf32, #tpu.memory_space<vmem>>, %arg5: memref<256x256xbf16, #tpu.memory_space<vmem>>, %arg6: memref<1x256xf32, #tpu.memory_space<vmem>>, %arg7: memref<1x256xf32, #tpu.memory_space<vmem>>, %arg8: memref<256x128xbf16, #tpu.memory_space<vmem>>, %arg9: memref<1x128xf32, #tpu.memory_space<vmem>>, %arg10: memref<1x128xf32, #tpu.memory_space<vmem>>, %arg11: memref<8x128xf32, #tpu.memory_space<vmem>>) attributes {dimension_semantics = [#tpu.dimension_semantics<parallel>], iteration_bounds = array<i64: 1>, scalar_prefetch = 0 : i64, scratch_operands = 0 : i64, tpu.core_type = #tpu.core_type<tc>, window_params = [{transform_indices = @transform_0, window_bounds = array<i64: 8, 128>}, {pipeline_mode = #tpu.pipeline_mode<synchronous>, transform_indices = @transform_1, window_bounds = array<i64: 128, 256>}, {pipeline_mode = #tpu.pipeline_mode<synchronous>, transform_indices = @transform_2, window_bounds = array<i64: 1, 256>}, {pipeline_mode = #tpu.pipeline_mode<synchronous>, transform_indices = @transform_3, window_bounds = array<i64: 1, 256>}, {pipeline_mode = #tpu.pipeline_mode<synchronous>, transform_indices = @transform_4, window_bounds = array<i64: 256, 256>}, {pipeline_mode = #tpu.pipeline_mode<synchronous>, transform_indices = @transform_5, window_bounds = array<i64: 1, 256>}, {pipeline_mode = #tpu.pipeline_mode<synchronous>, transform_indices = @transform_6, window_bounds = array<i64: 1, 256>}, {pipeline_mode = #tpu.pipeline_mode<synchronous>, transform_indices = @transform_7, window_bounds = array<i64: 256, 128>}, {pipeline_mode = #tpu.pipeline_mode<synchronous>, transform_indices = @transform_8, window_bounds = array<i64: 1, 128>}, {pipeline_mode = #tpu.pipeline_mode<synchronous>, transform_indices = @transform_9, window_bounds = array<i64: 1, 128>}, {transform_indices = @transform_10, window_bounds = array<i64: 8, 128>}]} {
    %c0 = arith.constant 0 : index
    %c0_0 = arith.constant 0 : index
    %0 = vector.load %arg1[%c0, %c0_0] : memref<8x128xbf16, #tpu.memory_space<vmem>>, vector<8x128xbf16>
    %c0_1 = arith.constant 0 : index
    %c0_2 = arith.constant 0 : index
    %1 = vector.load %arg2[%c0_1, %c0_2] : memref<128x256xbf16, #tpu.memory_space<vmem>>, vector<128x256xbf16>
    %cst = arith.constant dense<0.000000e+00> : vector<8x256xf32>
    %2 = tpu.matmul %0, %1, %cst {dimension_numbers = #tpu.dot_dimension_numbers<[1], [0], [0], [1], [0, 0, 1, 1], [], []>} : vector<8x128xbf16>, vector<128x256xbf16>, vector<8x256xf32> -> vector<8x256xf32>
    %c0_3 = arith.constant 0 : index
    %c0_4 = arith.constant 0 : index
    %3 = vector.load %arg3[%c0_3, %c0_4] : memref<1x256xf32, #tpu.memory_space<vmem>>, vector<1x256xf32>
    %4 = vector.broadcast %3 : vector<1x256xf32> to vector<8x256xf32>
    %5 = arith.mulf %2, %4 : vector<8x256xf32>
    %c0_5 = arith.constant 0 : index
    %c0_6 = arith.constant 0 : index
    %6 = vector.load %arg4[%c0_5, %c0_6] : memref<1x256xf32, #tpu.memory_space<vmem>>, vector<1x256xf32>
    %7 = vector.broadcast %6 : vector<1x256xf32> to vector<8x256xf32>
    %8 = arith.addf %5, %7 : vector<8x256xf32>
    %cst_7 = arith.constant 0.000000e+00 : f32
    %9 = vector.broadcast %cst_7 : f32 to vector<8x256xf32>
    %10 = arith.maximumf %8, %9 : vector<8x256xf32>
    %11 = arith.truncf %10 : vector<8x256xf32> to vector<8x256xbf16>
    %c0_8 = arith.constant 0 : index
    %c0_9 = arith.constant 0 : index
    %12 = vector.load %arg5[%c0_8, %c0_9] : memref<256x256xbf16, #tpu.memory_space<vmem>>, vector<256x256xbf16>
    %cst_10 = arith.constant dense<0.000000e+00> : vector<8x256xf32>
    %13 = tpu.matmul %11, %12, %cst_10 {dimension_numbers = #tpu.dot_dimension_numbers<[1], [0], [0], [1], [0, 0, 1, 1], [], []>} : vector<8x256xbf16>, vector<256x256xbf16>, vector<8x256xf32> -> vector<8x256xf32>
    %c0_11 = arith.constant 0 : index
    %c0_12 = arith.constant 0 : index
    %14 = vector.load %arg6[%c0_11, %c0_12] : memref<1x256xf32, #tpu.memory_space<vmem>>, vector<1x256xf32>
    %15 = vector.broadcast %14 : vector<1x256xf32> to vector<8x256xf32>
    %16 = arith.mulf %13, %15 : vector<8x256xf32>
    %c0_13 = arith.constant 0 : index
    %c0_14 = arith.constant 0 : index
    %17 = vector.load %arg7[%c0_13, %c0_14] : memref<1x256xf32, #tpu.memory_space<vmem>>, vector<1x256xf32>
    %18 = vector.broadcast %17 : vector<1x256xf32> to vector<8x256xf32>
    %19 = arith.addf %16, %18 : vector<8x256xf32>
    %cst_15 = arith.constant 0.000000e+00 : f32
    %20 = vector.broadcast %cst_15 : f32 to vector<8x256xf32>
    %21 = arith.maximumf %19, %20 : vector<8x256xf32>
    %22 = arith.truncf %21 : vector<8x256xf32> to vector<8x256xbf16>
    %c0_16 = arith.constant 0 : index
    %c0_17 = arith.constant 0 : index
    %23 = vector.load %arg8[%c0_16, %c0_17] : memref<256x128xbf16, #tpu.memory_space<vmem>>, vector<256x128xbf16>
    %cst_18 = arith.constant dense<0.000000e+00> : vector<8x128xf32>
    %24 = tpu.matmul %22, %23, %cst_18 {dimension_numbers = #tpu.dot_dimension_numbers<[1], [0], [0], [1], [0, 0, 1, 1], [], []>} : vector<8x256xbf16>, vector<256x128xbf16>, vector<8x128xf32> -> vector<8x128xf32>
    %c0_19 = arith.constant 0 : index
    %c0_20 = arith.constant 0 : index
    %25 = vector.load %arg9[%c0_19, %c0_20] : memref<1x128xf32, #tpu.memory_space<vmem>>, vector<1x128xf32>
    %26 = vector.broadcast %25 : vector<1x128xf32> to vector<8x128xf32>
    %27 = arith.mulf %24, %26 : vector<8x128xf32>
    %c0_21 = arith.constant 0 : index
    %c0_22 = arith.constant 0 : index
    %28 = vector.load %arg10[%c0_21, %c0_22] : memref<1x128xf32, #tpu.memory_space<vmem>>, vector<1x128xf32>
    %29 = vector.broadcast %28 : vector<1x128xf32> to vector<8x128xf32>
    %30 = arith.addf %27, %29 : vector<8x128xf32>
    %cst_23 = arith.constant dense<0xFF800000> : vector<8xf32>
    %31 = vector.multi_reduction <maximumf>, %30, %cst_23 [1] : vector<8x128xf32> to vector<8xf32>
    %32 = vector.shape_cast %31 : vector<8xf32> to vector<8x1xf32>
    %33 = vector.broadcast %32 : vector<8x1xf32> to vector<8x128xf32>
    %34 = arith.subf %30, %33 : vector<8x128xf32>
    %35 = math.exp %34 : vector<8x128xf32>
    %cst_24 = arith.constant dense<0.000000e+00> : vector<8xf32>
    %36 = vector.multi_reduction <add>, %35, %cst_24 [1] : vector<8x128xf32> to vector<8xf32>
    %37 = vector.shape_cast %36 : vector<8xf32> to vector<8x1xf32>
    %38 = math.log %37 : vector<8x1xf32>
    %39 = vector.broadcast %38 : vector<8x1xf32> to vector<8x128xf32>
    %40 = arith.subf %34, %39 : vector<8x128xf32>
    %c0_25 = arith.constant 0 : index
    %c0_26 = arith.constant 0 : index
    %41 = vector.load %arg11[%c0_25, %c0_26] : memref<8x128xf32, #tpu.memory_space<vmem>>, vector<8x128xf32>
    tpu.vector_store %arg11[%c0_25, %c0_26], %40 {strides = array<i32>} : memref<8x128xf32, #tpu.memory_space<vmem>>, vector<8x128xf32>,
    return
  }
  func.func @transform_0(%arg0: i32) -> (i32, i32) {
    %c0_i32 = arith.constant 0 : i32
    %c0_i32_0 = arith.constant 0 : i32
    return %arg0, %c0_i32 : i32, i32
  }
  func.func @transform_1(%arg0: i32) -> (i32, i32) {
    %c0_i32 = arith.constant 0 : i32
    %c0_i32_0 = arith.constant 0 : i32
    %c0_i32_1 = arith.constant 0 : i32
    return %c0_i32, %c0_i32_0 : i32, i32
  }
  func.func @transform_2(%arg0: i32) -> (i32, i32) {
    %c0_i32 = arith.constant 0 : i32
    %c0_i32_0 = arith.constant 0 : i32
    %c0_i32_1 = arith.constant 0 : i32
    return %c0_i32, %c0_i32_0 : i32, i32
  }
  func.func @transform_3(%arg0: i32) -> (i32, i32) {
    %c0_i32 = arith.constant 0 : i32
    %c0_i32_0 = arith.constant 0 : i32
    %c0_i32_1 = arith.constant 0 : i32
    return %c0_i32, %c0_i32_0 : i32, i32
  }
  func.func @transform_4(%arg0: i32) -> (i32, i32) {
    %c0_i32 = arith.constant 0 : i32
    %c0_i32_0 = arith.constant 0 : i32
    %c0_i32_1 = arith.constant 0 : i32
    return %c0_i32, %c0_i32_0 : i32, i32
  }
  func.func @transform_5(%arg0: i32) -> (i32, i32) {
    %c0_i32 = arith.constant 0 : i32
    %c0_i32_0 = arith.constant 0 : i32
    %c0_i32_1 = arith.constant 0 : i32
    return %c0_i32, %c0_i32_0 : i32, i32
  }
  func.func @transform_6(%arg0: i32) -> (i32, i32) {
    %c0_i32 = arith.constant 0 : i32
    %c0_i32_0 = arith.constant 0 : i32
    %c0_i32_1 = arith.constant 0 : i32
    return %c0_i32, %c0_i32_0 : i32, i32
  }
  func.func @transform_7(%arg0: i32) -> (i32, i32) {
    %c0_i32 = arith.constant 0 : i32
    %c0_i32_0 = arith.constant 0 : i32
    %c0_i32_1 = arith.constant 0 : i32
    return %c0_i32, %c0_i32_0 : i32, i32
  }
  func.func @transform_8(%arg0: i32) -> (i32, i32) {
    %c0_i32 = arith.constant 0 : i32
    %c0_i32_0 = arith.constant 0 : i32
    %c0_i32_1 = arith.constant 0 : i32
    return %c0_i32, %c0_i32_0 : i32, i32
  }
  func.func @transform_9(%arg0: i32) -> (i32, i32) {
    %c0_i32 = arith.constant 0 : i32
    %c0_i32_0 = arith.constant 0 : i32
    %c0_i32_1 = arith.constant 0 : i32
    return %c0_i32, %c0_i32_0 : i32, i32
  }
  func.func @transform_10(%arg0: i32) -> (i32, i32) {
    %c0_i32 = arith.constant 0 : i32
    %c0_i32_0 = arith.constant 0 : i32
    return %arg0, %c0_i32 : i32, i32
  }
}

</mosaic_0001>

<bundles_post_ra>
// kernel: tpu_custom_call.1
= control target key start
LH: loop header
LB: loop body
LE: loop exit
PB: predicated region body
PF: predicated region fallthrough
CT: control target
= control target key end

     0   :  { %15 = vsyncpa [#allocation3], 0  ;;  %s1340_s0 = inlined_call_operand.hbm [shape: bf16[8,128], index: 0, kind: input, shape index: {}]   ;;  %s1341_s1 = inlined_call_operand.hbm [shape: bf16[128,256], index: 1, kind: input, shape index: {}]   ;;  %s1342_s2 = inlined_call_operand.hbm [shape: f32[1,256], index: 2, kind: input, shape index: {}]   ;;  %s1343_s3 = inlined_call_operand.vmem [shape: f32[1,256], index: 3, kind: input, shape index: {}]   ;;  %s1344_s4 = inlined_call_operand.hbm [shape: bf16[256,256], index: 4, kind: input, shape index: {}]   ;;  %s1345_s5 = inlined_call_operand.vmem [shape: f32[1,256], index: 5, kind: input, shape index: {}]   ;;  %s1346_s6 = inlined_call_operand.hbm [shape: f32[1,256], index: 6, kind: input, shape index: {}]   ;;  %s1347_s7 = inlined_call_operand.hbm [shape: bf16[256,128], index: 7, kind: input, shape index: {}]   ;;  %s1348_s8 = inlined_call_operand.vmem [shape: f32[1,128], index: 8, kind: input, shape index: {}]   ;;  %s1349_s9 = inlined_call_operand.vmem [shape: f32[1,128], index: 9, kind: input, shape index: {}]   ;;  %s1350_s10 = inlined_call_operand.hbm [shape: f32[8,128], index: 10, kind: output, shape index: {}]  }
   0x1   :  { %16 = vsyncpa [#allocation6], 0 }
   0x2   :  { %17 = vsyncpa [#allocation9], 0 }
   0x3   :  { %18 = vsyncpa [#allocation12], 0  ;;  %s35_s15 = sshll.u32 %s1341_s1, 4  ;;  %s36_s15 = int_to_ptr.hbm [resolvable:$true] %s35_s15 }
   0x4   :  { %19 = vsyncpa [#allocation4], 0  ;;  %s1241_s16 = smov [#allocation5]   ;;  %s61_s20 = sshll.u32 %s1344_s4, 4  ;;  %s62_s20 = int_to_ptr.hbm [resolvable:$true] %s61_s20 }
   0x5   :  { %s37_s17 = sshll.u32 %s1241_s16, 4  ;;  %s1242_s21 = smov 128   ;;  %s38_s17 = int_to_ptr.vmem [resolvable:$true] %s37_s17 }
   0x6   :  { %s1243_s22 = smov 8   ;;  %s1244_s23 = smov [#allocation8]  }
   0x7   :  { %43 = dma.hbm_to_vmem [thread:$0]  %s36_s15, 2048, %s38_s17, [#allocation6], %s1242_s21, %s1242_s21, %s1243_s22  }
   0x8   :  { %s63_s24 = sshll.u32 %s1244_s23, 4  ;;  %s25_s27 = sshll.u32 %s1340_s0, 4  ;;  %s64_s24 = int_to_ptr.vmem [resolvable:$true] %s63_s24  ;;  %s26_s27 = int_to_ptr.hbm [resolvable:$true] %s25_s27 }
   0x9   :  { %69 = dma.hbm_to_vmem [thread:$0]  %s62_s20, 4096, %s64_s24, [#allocation9], %s1242_s21, %s1242_s21, %s1243_s22  }
   0xa   :  { %s49_s29 = sshll.u32 %s1342_s2, 4  ;;  %s1245_s30 = smov [#allocation2]   ;;  %s50_s29 = int_to_ptr.hbm [resolvable:$true] %s49_s29 }
   0xb   :  { %s27_s11 = sshll.u32 %s1245_s30, 4  ;;  %s1246_s4 = smov [#allocation7]   ;;  %s28_s11 = int_to_ptr.vmem [resolvable:$true] %s27_s11 }
   0xc   :  { %30 = dma.hbm_to_vmem [thread:$0]  %s26_s27, 64, %s28_s11, [#allocation3]  }
   0xd   :  { %s51_s12 = sshll.u32 %s1246_s4, 4  ;;  %s77_s15 = sshll.u32 %s1346_s6, 4  ;;  %s52_s12 = int_to_ptr.vmem [resolvable:$true] %s51_s12  ;;  %s78_s15 = int_to_ptr.hbm [resolvable:$true] %s77_s15 }
   0xe   :  { %54 = dma.hbm_to_vmem [thread:$0]  %s50_s29, 32, %s52_s12, [#allocation6]  }
   0xf   :  { %s87_s17 = sshll.u32 %s1347_s7, 4  ;;  %s1247_s18 = smov [#allocation10]   ;;  %s88_s17 = int_to_ptr.hbm [resolvable:$true] %s87_s17 }
  0x10   :  { %s79_s2 = sshll.u32 %s1247_s18, 4  ;;  %s1248_s19 = smov [#allocation11]   ;;  %s80_s2 = int_to_ptr.vmem [resolvable:$true] %s79_s2 }
  0x11   :  { %82 = dma.hbm_to_vmem [thread:$0]  %s78_s15, 32, %s80_s2, [#allocation9]  }
  0x12   :  { %s89_s20 = sshll.u32 %s1248_s19, 4  ;;  %s1249_s21 = smov 64   ;;  %s90_s20 = int_to_ptr.vmem [resolvable:$true] %s89_s20 }
  0x13   :  { %s1250_s22 = smov 4  }
  0x14   :  { %95 = dma.hbm_to_vmem [thread:$0]  %s88_s17, 2048, %s90_s20, [#allocation12], %s1249_s21, %s1249_s21, %s1250_s22  }
  0x15   :  { %1231 = dma.done.wait [#allocation3], 64  }
  0x16   :  { %1232 = vsyncadd [#allocation3], 4294967232 }
  0x17   :  { %1233 = dma.done.wait [#allocation6], 2080  }
  0x18   :  { %1234 = vsyncadd [#allocation6], 4294965216 }
  0x19   :  { %1235 = dma.done.wait [#allocation9], 4128  }
  0x1a   :  { %1236 = vsyncadd [#allocation9], 4294963168 }
  0x1b   :  { %1237 = dma.done.wait [#allocation12], 2048  }
  0x1c   :  { %1238 = vsyncadd [#allocation12], 4294965248  ;;  %v784_v0 = vld [vmem:[#allocation5 + $0x70] sm:$0xf]  ;;  %v997_v1 = vld [vmem:[#allocation5 + $0x74] sm:$0xf0] }
  0x1d   :  { %v996_v2 = vld [vmem:[#allocation5 + $0x74] sm:$0xf]  ;;  %v785_v3 = vor.u32 %v997_v1, %v784_v0  ;;  %v786_v4 = vld [vmem:[#allocation5 + $0x78] sm:$0xf0]  ;;  %v776_v5 = vld [vmem:[#allocation5 + $0x60] sm:$0xf] }
  0x1e   :  { %v995_v6 = vld [vmem:[#allocation5 + $0x64] sm:$0xf0]  ;;  %v789_v7 = vor.u32 %v996_v2, %v786_v4  ;;  %v994_v8 = vld [vmem:[#allocation5 + $0x64] sm:$0xf]  ;;  %v778_v9 = vld [vmem:[#allocation5 + $0x68] sm:$0xf0] }
  0x1f   :  { %221 = vmatpush.bf16.msra.mxu0 %v785_v3  ;;  %v777_v10 = vor.u32 %v995_v6, %v776_v5  ;;  %v781_v11 = vor.u32 %v994_v8, %v778_v9  ;;  %v768_v12 = vld [vmem:[#allocation5 + $0x50] sm:$0xf]  ;;  %v993_v13 = vld [vmem:[#allocation5 + $0x54] sm:$0xf0]  ;;  %v992_v14 = vld [vmem:[#allocation5 + $0x54] sm:$0xf] }
  0x20   :  { %234 = vmatpush.bf16.msra.mxu1 %v789_v7  ;;  %v770_v15 = vld [vmem:[#allocation5 + $0x58] sm:$0xf0]  ;;  %v769_v16 = vor.u32 %v993_v13, %v768_v12  ;;  %v760_v18 = vld [vmem:[#allocation5 + $0x40] sm:$0xf]  ;;  %v991_v19 = vld [vmem:[#allocation5 + $0x44] sm:$0xf0] }
  0x21   :  { %v773_v17 = vor.u32 %v992_v14, %v770_v15  ;;  %v990_v20 = vld [vmem:[#allocation5 + $0x44] sm:$0xf]  ;;  %v762_v21 = vld [vmem:[#allocation5 + $0x48] sm:$0xf0]  ;;  %v761_v22 = vor.u32 %v991_v19, %v760_v18  ;;  %v848_v23 = vld [vmem:[#allocation8 + $0x70] sm:$0xf] }
  0x22   :  { %v1013_v24 = vld [vmem:[#allocation8 + $0x74] sm:$0xf0]  ;;  %v912_v25 = vld [vmem:[#allocation8 + $0xf0] sm:$0xf]  ;;  %v765_v26 = vor.u32 %v990_v20, %v762_v21  ;;  %v840_v34 = vld [vmem:[#allocation8 + $0x60] sm:$0xf] }
  0x23   :  { %222 = vmatpush.bf16.msra.mxu0 %v777_v10  ;;  %v752_v27 = vld [vmem:[#allocation5 + $0x30] sm:$0xf]  ;;  %v989_v28 = vld [vmem:[#allocation5 + $0x34] sm:$0xf0]  ;;  %v849_v29 = vor.u32 %v1013_v24, %v848_v23  ;;  %v988_v31 = vld [vmem:[#allocation5 + $0x34] sm:$0xf] }
  0x24   :  { %235 = vmatpush.bf16.msra.mxu1 %v781_v11  ;;  %v1029_v30 = vld [vmem:[#allocation8 + $0xf4] sm:$0xf0]  ;;  %v1011_v35 = vld [vmem:[#allocation8 + $0x64] sm:$0xf0]  ;;  %v904_v36 = vld [vmem:[#allocation8 + $0xe0] sm:$0xf]  ;;  %v753_v38 = vor.u32 %v989_v28, %v752_v27 }
  0x25   :  { %v754_v32 = vld [vmem:[#allocation5 + $0x38] sm:$0xf0]  ;;  %v913_v33 = vor.u32 %v1029_v30, %v912_v25  ;;  %459 = vmatpush.bf16.msra.mxu2 %v849_v29  ;;  %v1027_v37 = vld [vmem:[#allocation8 + $0xe4] sm:$0xf0]  ;;  %v744_v39 = vld [vmem:[#allocation5 + $0x20] sm:$0xf]  ;;  %v841_v41 = vor.u32 %v1011_v35, %v840_v34 }
  0x26   :  { %v987_v40 = vld [vmem:[#allocation5 + $0x24] sm:$0xf0]  ;;  %v905_v42 = vor.u32 %v1027_v37, %v904_v36  ;;  %v757_v43 = vor.u32 %v988_v31, %v754_v32  ;;  %v986_v44 = vld [vmem:[#allocation5 + $0x24] sm:$0xf]  ;;  %v832_v45 = vld [vmem:[#allocation8 + $0x50] sm:$0xf] }
  0x27   :  { %223 = vmatpush.bf16.msra.mxu0 %v769_v16  ;;  %472 = vmatpush.bf16.msra.mxu3 %v913_v33  ;;  %v1009_v46 = vld [vmem:[#allocation8 + $0x54] sm:$0xf0]  ;;  %v746_v47 = vld [vmem:[#allocation5 + $0x28] sm:$0xf0]  ;;  %v896_v48 = vld [vmem:[#allocation8 + $0xd0] sm:$0xf]  ;;  %v745_v51 = vor.u32 %v987_v40, %v744_v39 }
  0x28   :  { %236 = vmatpush.bf16.msra.mxu1 %v773_v17  ;;  %v1025_v49 = vld [vmem:[#allocation8 + $0xd4] sm:$0xf0]  ;;  %v833_v50 = vor.u32 %v1009_v46, %v832_v45  ;;  %v736_v52 = vld [vmem:[#allocation5 + $0x10] sm:$0xf]  ;;  %v824_v54 = vld [vmem:[#allocation8 + $0x40] sm:$0xf]  ;;  %v749_v56 = vor.u32 %v986_v44, %v746_v47 }
  0x29   :  { %460 = vmatpush.bf16.msra.mxu2 %v841_v41  ;;  %v897_v53 = vor.u32 %v1025_v49, %v896_v48  ;;  %v1007_v55 = vld [vmem:[#allocation8 + $0x44] sm:$0xf0]  ;;  %v985_v57 = vld [vmem:[#allocation5 + $0x14] sm:$0xf0]  ;;  %v888_v58 = vld [vmem:[#allocation8 + $0xc0] sm:$0xf] }
  0x2a   :  { %v1023_v59 = vld [vmem:[#allocation8 + $0xc4] sm:$0xf0]  ;;  %v984_v60 = vld [vmem:[#allocation5 + $0x14] sm:$0xf]  ;;  %v738_v61 = vld [vmem:[#allocation5 + $0x18] sm:$0xf0]  ;;  %v825_v63 = vor.u32 %v1007_v55, %v824_v54  ;;  %v737_v0 = vor.u32 %v985_v57, %v736_v52 }
  0x2b   :  { %224 = vmatpush.bf16.msra.mxu0 %v761_v22  ;;  %473 = vmatpush.bf16.msra.mxu3 %v905_v42  ;;  %v728_v62 = vld [vmem:[#allocation5] sm:$0xf]  ;;  %v983_v1 = vld [vmem:[#allocation5 + $0x4] sm:$0xf0]  ;;  %v889_v2 = vor.u32 %v1023_v59, %v888_v58  ;;  %v816_v3 = vld [vmem:[#allocation8 + $0x30] sm:$0xf]  ;;  %v741_v5 = vor.u32 %v984_v60, %v738_v61 }
  0x2c   :  { %237 = vmatpush.bf16.msra.mxu1 %v765_v26  ;;  %v1005_v4 = vld [vmem:[#allocation8 + $0x34] sm:$0xf0]  ;;  %v982_v6 = vld [vmem:[#allocation5 + $0x4] sm:$0xf]  ;;  %v880_v7 = vld [vmem:[#allocation8 + $0xb0] sm:$0xf]  ;;  %v729_v16 = vor.u32 %v983_v1, %v728_v62 }
  0x2d   :  { %461 = vmatpush.bf16.msra.mxu2 %v833_v50  ;;  %v1021_v8 = vld [vmem:[#allocation8 + $0xb4] sm:$0xf0]  ;;  %v730_v9 = vld [vmem:[#allocation5 + $0x8] sm:$0xf0]  ;;  %v1012_v10 = vld [vmem:[#allocation8 + $0x74] sm:$0xf]  ;;  %v817_v14 = vor.u32 %v1005_v4, %v816_v3 }
  0x2e   :  { %v850_v11 = vld [vmem:[#allocation8 + $0x78] sm:$0xf0]  ;;  %v1028_v12 = vld [vmem:[#allocation8 + $0xf4] sm:$0xf]  ;;  %v808_v15 = vld [vmem:[#allocation8 + $0x20] sm:$0xf]  ;;  %v881_v17 = vor.u32 %v1021_v8, %v880_v7  ;;  %v733_v19 = vor.u32 %v982_v6, %v730_v9 }
  0x2f   :  { %225 = vmatpush.bf16.msra.mxu0 %v753_v38  ;;  %474 = vmatpush.bf16.msra.mxu3 %v897_v53  ;;  %v914_v13 = vld [vmem:[#allocation8 + $0xf8] sm:$0xf0]  ;;  %v1003_v18 = vld [vmem:[#allocation8 + $0x24] sm:$0xf0]  ;;  %v853_v20 = vor.u32 %v1012_v10, %v850_v11  ;;  %v872_v21 = vld [vmem:[#allocation8 + $0xa0] sm:$0xf] }
  0x30   :  { %238 = vmatpush.bf16.msra.mxu1 %v757_v43  ;;  %v1019_v22 = vld [vmem:[#allocation8 + $0xa4] sm:$0xf0]  ;;  %v917_v23 = vor.u32 %v1028_v12, %v914_v13  ;;  %v1010_v24 = vld [vmem:[#allocation8 + $0x64] sm:$0xf]  ;;  %v842_v25 = vld [vmem:[#allocation8 + $0x68] sm:$0xf0]  ;;  %v809_v28 = vor.u32 %v1003_v18, %v808_v15 }
  0x31   :  { %462 = vmatpush.bf16.msra.mxu2 %v825_v63  ;;  %v1026_v26 = vld [vmem:[#allocation8 + $0xe4] sm:$0xf]  ;;  %v906_v27 = vld [vmem:[#allocation8 + $0xe8] sm:$0xf0]  ;;  %v124_v29 = vld [vmem:[#allocation2] sm:$0xf]  ;;  %v873_v30 = vor.u32 %v1019_v22, %v872_v21  ;;  %v845_v31 = vor.u32 %v1010_v24, %v842_v25 }
  0x32   :  { %v909_v32 = vor.u32 %v1026_v26, %v906_v27  ;;  %v1008_v33 = vld [vmem:[#allocation8 + $0x54] sm:$0xf]  ;;  %v834_v34 = vld [vmem:[#allocation8 + $0x58] sm:$0xf0]  ;;  %v1006_v39 = vld [vmem:[#allocation8 + $0x44] sm:$0xf] }
  0x33   :  { %226 = vmatpush.bf16.msra.mxu0 %v745_v51  ;;  %475 = vmatpush.bf16.msra.mxu3 %v889_v2  ;;  %v1024_v35 = vld [vmem:[#allocation8 + $0xd4] sm:$0xf]  ;;  %v898_v36 = vld [vmem:[#allocation8 + $0xd8] sm:$0xf0]  ;;  %v837_v37 = vor.u32 %v1008_v33, %v834_v34  ;;  %v826_v40 = vld [vmem:[#allocation8 + $0x48] sm:$0xf0] }
  0x34   :  { %239 = vmatpush.bf16.msra.mxu1 %v749_v56  ;;  %v901_v38 = vor.u32 %v1024_v35, %v898_v36  ;;  %v1022_v41 = vld [vmem:[#allocation8 + $0xc4] sm:$0xf]  ;;  %v890_v42 = vld [vmem:[#allocation8 + $0xc8] sm:$0xf0]  ;;  %v829_v43 = vor.u32 %v1006_v39, %v826_v40  ;;  %v1004_v45 = vld [vmem:[#allocation8 + $0x34] sm:$0xf] }
  0x35   :  { %463 = vmatpush.bf16.msra.mxu2 %v817_v14  ;;  %v893_v44 = vor.u32 %v1022_v41, %v890_v42  ;;  %v818_v46 = vld [vmem:[#allocation8 + $0x38] sm:$0xf0]  ;;  %v1020_v47 = vld [vmem:[#allocation8 + $0xb4] sm:$0xf]  ;;  %v1002_v51 = vld [vmem:[#allocation8 + $0x24] sm:$0xf] }
  0x36   :  { %v882_v48 = vld [vmem:[#allocation8 + $0xb8] sm:$0xf0]  ;;  %v821_v49 = vor.u32 %v1004_v45, %v818_v46  ;;  %v810_v52 = vld [vmem:[#allocation8 + $0x28] sm:$0xf0]  ;;  %v1018_v53 = vld [vmem:[#allocation8 + $0xa4] sm:$0xf] }
  0x37   :  { %227 = vmatpush.bf16.msra.mxu0 %v737_v0  ;;  %476 = vmatpush.bf16.msra.mxu3 %v881_v17  ;;  %v885_v50 = vor.u32 %v1020_v47, %v882_v48  ;;  %v874_v54 = vld [vmem:[#allocation8 + $0xa8] sm:$0xf0]  ;;  %v813_v55 = vor.u32 %v1002_v51, %v810_v52  ;;  %v800_v57 = vld [vmem:[#allocation8 + $0x10] sm:$0xf]  ;;  %v1001_v58 = vld [vmem:[#allocation8 + $0x14] sm:$0xf0] }
  0x38   :  { %240 = vmatpush.bf16.msra.mxu1 %v741_v5  ;;  %v877_v56 = vor.u32 %v1018_v53, %v874_v54  ;;  %v801_v59 = vor.u32 %v1001_v58, %v800_v57  ;;  %v864_v60 = vld [vmem:[#allocation8 + $0x90] sm:$0xf]  ;;  %v1017_v61 = vld [vmem:[#allocation8 + $0x94] sm:$0xf0]  ;;  %v1000_v62 = vld [vmem:[#allocation8 + $0x14] sm:$0xf] }
  0x39   :  { %464 = vmatpush.bf16.msra.mxu2 %v809_v28  ;;  %v865_v63 = vor.u32 %v1017_v61, %v864_v60  ;;  %v802_v0 = vld [vmem:[#allocation8 + $0x18] sm:$0xf0]  ;;  %v1016_v1 = vld [vmem:[#allocation8 + $0x94] sm:$0xf]  ;;  %v792_v5 = vld [vmem:[#allocation8] sm:$0xf] }
  0x3a   :  { %v866_v2 = vld [vmem:[#allocation8 + $0x98] sm:$0xf0]  ;;  %v805_v3 = vor.u32 %v1000_v62, %v802_v0  ;;  %v999_v6 = vld [vmem:[#allocation8 + $0x4] sm:$0xf0]  ;;  %v856_v7 = vld [vmem:[#allocation8 + $0x80] sm:$0xf] }
  0x3b   :  { %228 = vmatpush.bf16.msra.mxu0 %v729_v16  ;;  %477 = vmatpush.bf16.msra.mxu3 %v873_v30  ;;  %v869_v4 = vor.u32 %v1016_v1, %v866_v2  ;;  %v793_v8 = vor.u32 %v999_v6, %v792_v5  ;;  %v1015_v9 = vld [vmem:[#allocation8 + $0x84] sm:$0xf0]  ;;  %v998_v10 = vld [vmem:[#allocation8 + $0x4] sm:$0xf]  ;;  %v794_v11 = vld [vmem:[#allocation8 + $0x8] sm:$0xf0] }
  0x3c   :  { %241 = vmatpush.bf16.msra.mxu1 %v733_v19  ;;  %v857_v12 = vor.u32 %v1015_v9, %v856_v7  ;;  %v797_v13 = vor.u32 %v998_v10, %v794_v11  ;;  %v1014_v14 = vld [vmem:[#allocation8 + $0x84] sm:$0xf]  ;;  %v858_v15 = vld [vmem:[#allocation8 + $0x88] sm:$0xf0]  ;;  %v1045_v17 = vld [vmem:[#allocation11 + $0x78] sm:$0xff] }
  0x3d   :  { %465 = vmatpush.bf16.msra.mxu2 %v801_v59  ;;  %v861_v16 = vor.u32 %v1014_v14, %v858_v15  ;;  %v1037_v18 = vld [vmem:[#allocation11 + $0x38] sm:$0xff]  ;;  %v1044_v19 = vld [vmem:[#allocation11 + $0x70] sm:$0xff]  ;;  %v1043_v21 = vld [vmem:[#allocation11 + $0x68] sm:$0xff] }
  0x3e   :  { %229 = vmatmul.bf16.vlgmr.msra.gmra.mxu0 %v124_v29  ;;  %v1035_v22 = vld [vmem:[#allocation11 + $0x28] sm:$0xff]  ;;  %v1034_v24 = vld [vmem:[#allocation11 + $0x20] sm:$0xff]  ;;  %v1041_v25 = vld [vmem:[#allocation11 + $0x58] sm:$0xff] }
  0x3f   :  { %485 = vmatpush.bf16.msrb.mxu0 %v853_v20  ;;  %242 = vmatmul.bf16.vlgmr.msra.gmra.mxu1 %v124_v29  ;;  %v1036_v20 = vld [vmem:[#allocation11 + $0x30] sm:$0xff]  ;;  %v247_v26 = vld [vmem:[#allocation7] sm:$0x3]  ;;  %v255_v27 = vld [vmem:[%s1343_s3] sm:$0x3] }
  0x40   :  { %498 = vmatpush.bf16.msrb.mxu1 %v917_v23  ;;  %478 = vmatpush.bf16.msra.mxu3 %v865_v63  ;;  %v1042_v23 = vld [vmem:[#allocation11 + $0x60] sm:$0xff]  ;;  %v249_v28 = vperm.slane %v247_v26, 0  ;;  %v250_v29 = vperm.slane %v247_v26, 1  ;;  %v257_v30 = vperm.slane %v255_v27, 0  ;;  %v1033_v45 = vld [vmem:[#allocation11 + $0x18] sm:$0xff]  ;;  %v1039_v46 = vld [vmem:[#allocation11 + $0x48] sm:$0xff] }
  0x41   :  { %466 = vmatpush.bf16.msra.mxu2 %v793_v8  ;;  %v1032_v47 = vld [vmem:[#allocation11 + $0x10] sm:$0xff]  ;;  %v1038_v48 = vld [vmem:[#allocation11 + $0x40] sm:$0xff]  ;;  %v511_v51 = vld [vmem:[%s1345_s5] sm:$0x3] }
  0x42   :  { %v519_v52 = vld [vmem:[#allocation10] sm:$0x3]  ;;  %v514_v54 = vperm.slane %v511_v51, 1  ;;  %v513_v61 = vperm.slane %v511_v51, 0  ;;  %v1058_v15 = vld [vmem:[%s1349_s9] ss:$0 sm:$0xff] }
  0x43   :  { %486 = vmatpush.bf16.msrb.mxu0 %v845_v31  ;;  %v522_v57 = vperm.slane %v519_v52, 1  ;;  %v521_v0 = vperm.slane %v519_v52, 0  ;;  %s713_s9 = sshll.u32 %s1350_s10, 4  ;;  %s714_s9 = int_to_ptr.hbm [resolvable:$true] %s713_s9 }
  0x44   :  { %499 = vmatpush.bf16.msrb.mxu1 %v909_v32  ;;  %479 = vmatpush.bf16.msra.mxu3 %v857_v12  ;;  %v258_v32 = vperm.slane %v255_v27, 1  ;;  %v1057_v12 = vld [vmem:[%s1348_s8] ss:$0 sm:$0xff]  ;;  %s1251_s8 = smov [#allocation13]  }
  0x45   :  { %659 = vmatpush.bf16.msrb.mxu2 %v1037_v18  ;;  %s711_s27 = sshll.u32 %s1251_s8, 4  ;;  %s712_s27 = int_to_ptr.vmem [resolvable:$true] %s711_s27 }
  0x47   :  { %487 = vmatpush.bf16.msrb.mxu0 %v837_v37 }
  0x48   :  { %500 = vmatpush.bf16.msrb.mxu1 %v901_v38  ;;  %672 = vmatpush.bf16.msrb.mxu3 %v1045_v17 }
  0x49   :  { %660 = vmatpush.bf16.msrb.mxu2 %v1036_v20 }
  0x4b   :  { %488 = vmatpush.bf16.msrb.mxu0 %v829_v43 }
  0x4c   :  { %501 = vmatpush.bf16.msrb.mxu1 %v893_v44  ;;  %673 = vmatpush.bf16.msrb.mxu3 %v1044_v19  ;;  %v1040_v44 = vld [vmem:[#allocation11 + $0x50] sm:$0xff] }
  0x4d   :  { %661 = vmatpush.bf16.msrb.mxu2 %v1035_v22 }
  0x4f   :  { %489 = vmatpush.bf16.msrb.mxu0 %v821_v49  ;;  %v1031_v49 = vld [vmem:[#allocation11 + $0x8] sm:$0xff] }
  0x50   :  { %502 = vmatpush.bf16.msrb.mxu1 %v885_v50  ;;  %674 = vmatpush.bf16.msrb.mxu3 %v1043_v21  ;;  %v1030_v50 = vld [vmem:[#allocation11] sm:$0xff] }
  0x51   :  { %662 = vmatpush.bf16.msrb.mxu2 %v1034_v24 }
  0x53   :  { %490 = vmatpush.bf16.msrb.mxu0 %v813_v55 }
  0x54   :  { %503 = vmatpush.bf16.msrb.mxu1 %v877_v56  ;;  %675 = vmatpush.bf16.msrb.mxu3 %v1042_v23 }
  0x55   :  { %663 = vmatpush.bf16.msrb.mxu2 %v1033_v45 }
  0x57   :  { %491 = vmatpush.bf16.msrb.mxu0 %v805_v3 }
  0x58   :  { %504 = vmatpush.bf16.msrb.mxu1 %v869_v4  ;;  %676 = vmatpush.bf16.msrb.mxu3 %v1041_v25 }
  0x59   :  { %664 = vmatpush.bf16.msrb.mxu2 %v1032_v47 }
  0x5b   :  { %492 = vmatpush.bf16.msrb.mxu0 %v797_v13 }
  0x5c   :  { %505 = vmatpush.bf16.msrb.mxu1 %v861_v16  ;;  %677 = vmatpush.bf16.msrb.mxu3 %v1040_v44 }
  0x5d   :  { %665 = vmatpush.bf16.msrb.mxu2 %v1031_v49 }
  0x60   :  { %678 = vmatpush.bf16.msrb.mxu3 %v1039_v46 }
  0x61   :  { %666 = vmatpush.bf16.msrb.mxu2 %v1030_v50 }
  0x64   :  { %679 = vmatpush.bf16.msrb.mxu3 %v1038_v48 }
  0xbb   :  { %v230_v31 = vpop.f32.mrf.mxu0 }
  0xbc   :  { %v253_v33 = vmul.f32 %v249_v28, %v230_v31  ;;  %v243_v34 = vpop.f32.mrf.mxu1 }
  0xbd   :  { %v254_v35 = vmul.f32 %v250_v29, %v243_v34 }
  0xbe   :  { %v261_v36 = vadd.f32 %v257_v30, %v253_v33 }
  0xbf   :  { %v262_v37 = vadd.f32 %v258_v32, %v254_v35 }
  0xc0   :  { %v263_v38 = vmax.f32 %v261_v36, 0.0 }
  0xc1   :  { %v264_v39 = vmax.f32 %v262_v37, 0.0 }
  0xc2   :  { %v265_v40 = vpack.c.bf16 %v263_v38, %v263_v38 }
  0xc3   :  { %v232_v41 = vpop.f32.mrf.mxu0  ;;  %v266_v42 = vpack.c.bf16 %v264_v39, %v264_v39 }
  0xc4   :  { %v245_v43 = vpop.f32.mrf.mxu1  ;;  %467 = vmatmul.bf16.vlgmr.msra.gmra.mxu2 %v265_v40  ;;  %493 = vmatmul.bf16.vlgmr.msrb.gmra.mxu0 %v265_v40 }
  0xc5   :  { %480 = vmatmul.bf16.vlgmr.msra.gmra.mxu3 %v266_v42  ;;  %506 = vmatmul.bf16.vlgmr.msrb.gmra.mxu1 %v266_v42 }
 0x141   :  { %v494_v53 = vpop.f32.mrf.mxu0 }
 0x142   :  { %v507_v55 = vpop.f32.mrf.mxu1 }
 0x143   :  { %v508_v56 = vadd.f32 %v507_v55, %v494_v53 }
 0x145   :  { %v518_v58 = vmul.f32 %v514_v54, %v508_v56 }
 0x147   :  { %v526_v59 = vadd.f32 %v522_v57, %v518_v58  ;;  %v468_v60 = vpop.f32.mrf.mxu2 }
 0x148   :  { %v481_v62 = vpop.f32.mrf.mxu3 }
 0x149   :  { %v482_v63 = vadd.f32 %v481_v62, %v468_v60  ;;  %v496_v1 = vpop.f32.mrf.mxu0  ;;  %v528_v2 = vmax.f32 %v526_v59, 0.0 }
 0x14a   :  { %v509_v3 = vpop.f32.mrf.mxu1 }
 0x14b   :  { %v517_v4 = vmul.f32 %v513_v61, %v482_v63  ;;  %v530_v5 = vpack.c.bf16 %v528_v2, %v528_v2 }
 0x14d   :  { %v525_v6 = vadd.f32 %v521_v0, %v517_v4  ;;  %680 = vmatmul.bf16.vlgmr.msrb.gmra.mxu3 %v530_v5 }
 0x14f   :  { %v470_v7 = vpop.f32.mrf.mxu2  ;;  %v527_v8 = vmax.f32 %v525_v6, 0.0 }
 0x150   :  { %v483_v9 = vpop.f32.mrf.mxu3 }
 0x151   :  { %v529_v10 = vpack.c.bf16 %v527_v8, %v527_v8 }
 0x153   :  { %667 = vmatmul.bf16.vlgmr.msrb.gmra.mxu2 %v529_v10 }
 0x1d0   :  { %v681_v11 = vpop.f32.mrf.mxu3 }
 0x1d6   :  { %v668_v13 = vpop.f32.mrf.mxu2 }
 0x1d7   :  { %v682_v14 = vadd.f32 %v681_v11, %v668_v13 }
 0x1d8   :  { %v683_v16 = vpop.f32.mrf.mxu3 }
 0x1d9   :  { %v689_v17 = vmul.f32 %v1057_v12, %v682_v14 }
 0x1db   :  { %v694_v18 = vadd.f32 %v1058_v15, %v689_v17 }
 0x1dd   :  { %695 = vmax.xlane.f32.xlu0 %v694_v18 }
 0x1de   :  { %v670_v19 = vpop.f32.mrf.mxu2 }
 0x250   :  { %v696_v20 = vpop.xlane.xlu0 %695 }
 0x251   :  { %v697_v21 = vsub.f32 %v694_v18, %v696_v20 }
 0x253   :  { %v698_v22 = vmul.f32 1.442695, %v697_v21 }
 0x255   :  { %1059 = vpow2.f32 %v698_v22 }
 0x25b   :  { %v1060_v23 = vpop.eup %1059 }
 0x25c   :  { %700 = vadd.xlane.f32.xlu0 %v1060_v23 }
 0x2cf   :  { %v701_v24 = vpop.xlane.xlu0 %700 }
 0x2d0   :  { %1061 = vlog2.f32 %v701_v24 }
 0x2d6   :  { %v1062_v25 = vpop.eup %1061 }
 0x2d7   :  { %v703_v26 = vmul.f32 0.6931472, %v1062_v25 }
 0x2d9   :  { %v704_v27 = vsub.f32 %v697_v21, %v703_v26 }
 0x2db   :  { %705 = vst [vmem:[#allocation13] sm:$0xff] %v704_v27 }
 0x2dc   :  { %716 = dma.vmem_to_hbm [thread:$0]  %s712_s27, 128, %s714_s9, [#allocation4]  }
 0x2dd   :  { %1239 = dma.done.wait [#allocation4], 128  }
 0x2de   :  { %1240 = vsyncadd [#allocation4], 4294967168 }
 0x2df   :  { %721 = vsyncpa [#allocation3], 1 }
 0x2e0   :  { %722 = vsyncpa [#allocation6], 1 }
 0x2e1   :  { %723 = vsyncpa [#allocation9], 1 }
 0x2e2   :  { %724 = vsyncpa [#allocation12], 1 }
 0x2e3   :  { %725 = vsyncpa [#allocation4], 1 }

</bundles_post_ra>
